<compile_context>
chip_gen: v7x
topology: tpu7x:2x2x1
jax: 0.10.0
libtpu: 0.0.40
codegen_flags: <defaults>
</compile_context>

<pallas_src>
import jax
import jax.numpy as jnp
from jax.experimental import pallas as pl
from jax.experimental.pallas import tpu as pltpu


def _expwarp6_kernel(scale_ref, slab_ref, out_ref, acc_ref):
    """slab_ref: (56, blk) = 7 operands x 8 sublanes each, lanes = batch chunk.
    Operand order: [target_p, lwarp_p, rwarp_p, warpless_q, lwarp_q, rwarp_q,
    diff]. Zero-padded positions contribute exactly 0 to the fused sum."""
    i = pl.program_id(0)

    @pl.when(i == 0)
    def _():
        acc_ref[...] = jnp.zeros_like(acc_ref)

    # Static ref-view slices (zero cost), each a full (8, blk) tile.
    t_p = slab_ref[0:8, :].astype(jnp.float32)
    lw_p = slab_ref[8:16, :].astype(jnp.float32)
    rw_p = slab_ref[16:24, :].astype(jnp.float32)
    wl_q = slab_ref[24:32, :].astype(jnp.float32)
    lw_q = slab_ref[32:40, :].astype(jnp.float32)
    rw_q = slab_ref[40:48, :].astype(jnp.float32)
    diff = slab_ref[48:56, :].astype(jnp.float32)

    # Fused: |t_p + d - lw_p| + |t_p - d - rw_p| + 0.5*(|w_q - lw_q| + |w_q - rw_q|)
    acc_ref[...] += (jnp.abs(t_p + diff - lw_p)
                     + jnp.abs(t_p - diff - rw_p)
                     + 0.5 * (jnp.abs(wl_q - lw_q) + jnp.abs(wl_q - rw_q)))

    # Single cross-lane reduce + scale + scalar SMEM store, last step only.
    @pl.when(i == pl.num_programs(0) - 1)
    def _():
        out_ref[0, 0] = jnp.sum(acc_ref[...]) * scale_ref[0, 0]


def exp_warp6_loss(warpless, lwarp, rwarp, target, diff, *,
                   pitch_warp: bool, block_cols: int = 8192):
    """Pallas implementation of ExpWarp6Loss.forward.

    warpless, lwarp, rwarp, target: (N, 2)   columns = [yaw, pitch]
    diff: (N,)  -- the torch.normal(mean, std, (N,)) sample (passed in so the
                   kernel is deterministic)
    Returns a scalar float32.
    """
    n = target.shape[0]
    p = int(pitch_warp)
    q = 1 - p

    rows = [
        target[:, p], lwarp[:, p], rwarp[:, p],
        warpless[:, q], lwarp[:, q], rwarp[:, q],
        diff.reshape(n),
    ]

    # Power-of-two lane buckets (min 128) -> few compiled variants across N;
    # 1/(3N) is a runtime scalar, so N itself never enters the kernel trace.
    cols = max(128, pl.next_power_of_2(pl.cdiv(n, 8)))
    blk = max(128, (min(int(block_cols), cols) // 128) * 128)  # multiple of 128
    cols = pl.cdiv(cols, blk) * blk                            # cols % blk == 0
    n_pad = 8 * cols

    # One contiguous lane-dense slab: each operand becomes a full (8, cols)
    # tile; padded positions are zero and contribute 0 to the fused sum.
    slab = jnp.stack(
        [jnp.pad(r.astype(jnp.float32), (0, n_pad - n)).reshape(8, cols)
         for r in rows],
        axis=0,
    ).reshape(56, cols)

    scale = jnp.full((1, 1), 1.0 / (3.0 * n), dtype=jnp.float32)

    out = pl.pallas_call(
        _expwarp6_kernel,
        out_shape=jax.ShapeDtypeStruct((1, 1), jnp.float32),
        grid=(cols // blk,),
        in_specs=[
            pl.BlockSpec((1, 1), lambda i: (0, 0),
                         memory_space=pltpu.MemorySpace.SMEM),
            pl.BlockSpec((56, blk), lambda i: (0, i)),
        ],
        out_specs=pl.BlockSpec((1, 1), lambda i: (0, 0),
                               memory_space=pltpu.MemorySpace.SMEM),
        scratch_shapes=[pltpu.VMEM((8, blk), jnp.float32)],
        compiler_params=pltpu.CompilerParams(
            dimension_semantics=("arbitrary",)),
    )(scale, slab)
    return out[0, 0]


def _reference(warpless, lwarp, rwarp, target, diff, *, pitch_warp: bool):
    """Pure-JAX reference mirroring the PyTorch forward."""
    p = int(pitch_warp)
    q = 1 - p
    lwarp_target = target[:, p] + diff
    rwarp_target = target[:, p] - diff
    loss_1 = jnp.mean(jnp.abs(lwarp_target - lwarp[:, p]))
    loss_2 = jnp.mean(jnp.abs(rwarp_target - rwarp[:, p]))
    loss_3 = jnp.mean(
        (jnp.abs(warpless[:, q] - lwarp[:, q])
         + jnp.abs(warpless[:, q] - rwarp[:, q])) / 2.0)
    return (loss_1 + loss_2 + loss_3) / 3.0


if __name__ == "__main__":
    # Module config: yaw_warp=0, pitch_warp=1  -> _Pwarp = True
    yaw_warp, pitch_warp = 0, 1
    assert yaw_warp * pitch_warp == 0 and yaw_warp + pitch_warp > 0
    pwarp = pitch_warp > 0
    target_mean, target_std = 3.0, 1.0

    batch = 8
    key = jax.random.PRNGKey(0)
    k1, k2, k3, k4, k5 = jax.random.split(key, 5)

    warpless = jax.random.normal(k1, (batch, 2), dtype=jnp.float32)
    lwarp = jax.random.normal(k2, (batch, 2), dtype=jnp.float32)
    rwarp = jax.random.normal(k3, (batch, 2), dtype=jnp.float32)
    target = jax.random.normal(k4, (batch, 2), dtype=jnp.float32)
    # torch.normal(self._mean, self._std, (len(target),)) -- deterministic here
    diff = target_mean + target_std * jax.random.normal(
        k5, (batch,), dtype=jnp.float32)

    loss = exp_warp6_loss(warpless, lwarp, rwarp, target, diff,
                          pitch_warp=pwarp)
    loss = jax.block_until_ready(loss)

    ref = _reference(warpless, lwarp, rwarp, target, diff, pitch_warp=pwarp)
    assert jnp.allclose(loss, ref, atol=1e-5, rtol=1e-5), (loss, ref)

    # Exercise a multi-block grid (N not a multiple of 8 or 128, blk < cols).
    big = 5000
    kb = jax.random.split(jax.random.PRNGKey(1), 5)
    wl_b = jax.random.normal(kb[0], (big, 2), dtype=jnp.float32)
    lw_b = jax.random.normal(kb[1], (big, 2), dtype=jnp.float32)
    rw_b = jax.random.normal(kb[2], (big, 2), dtype=jnp.float32)
    tg_b = jax.random.normal(kb[3], (big, 2), dtype=jnp.float32)
    df_b = target_mean + target_std * jax.random.normal(
        kb[4], (big,), dtype=jnp.float32)
    loss_b = jax.block_until_ready(
        exp_warp6_loss(wl_b, lw_b, rw_b, tg_b, df_b,
                       pitch_warp=pwarp, block_cols=256))
    ref_b = _reference(wl_b, lw_b, rw_b, tg_b, df_b, pitch_warp=pwarp)
    assert jnp.allclose(loss_b, ref_b, atol=1e-5, rtol=1e-5), (loss_b, ref_b)

    print("KERNEL_OK")
</pallas_src>

<mosaic_0001>
module attributes {stable_mosaic.version = 11 : i64} {
  func.func @_expwarp6_kernel(%arg0: i32, %arg1: memref<1x1xf32, #tpu.memory_space<smem>>, %arg2: memref<56x128xf32, #tpu.memory_space<vmem>>, %arg3: memref<1x1xf32, #tpu.memory_space<smem>>, %arg4: memref<8x128xf32, #tpu.memory_space<vmem>>) attributes {dimension_semantics = [#tpu.dimension_semantics<arbitrary>], iteration_bounds = array<i64: 1>, scalar_prefetch = 0 : i64, scratch_operands = 1 : i64, tpu.core_type = #tpu.core_type<tc>, window_params = [{transform_indices = @transform_0, window_bounds = array<i64: 1, 1>}, {transform_indices = @transform_1, window_bounds = array<i64: 56, 128>}, {transform_indices = @transform_2, window_bounds = array<i64: 1, 1>}]} {
    %c0_i32 = arith.constant 0 : i32
    %0 = arith.cmpi eq, %arg0, %c0_i32 : i32
    %1 = arith.extui %0 : i1 to i32
    %c0_i32_0 = arith.constant 0 : i32
    %2 = arith.cmpi ne, %1, %c0_i32_0 : i32
    scf.if %2 {
      %cst_14 = arith.constant 0.000000e+00 : f32
      %31 = vector.broadcast %cst_14 : f32 to vector<8x128xf32>
      %c0_15 = arith.constant 0 : index
      %c0_16 = arith.constant 0 : index
      %32 = vector.load %arg4[%c0_15, %c0_16] : memref<8x128xf32, #tpu.memory_space<vmem>>, vector<8x128xf32>
      tpu.vector_store %arg4[%c0_15, %c0_16], %31 {strides = array<i32>} : memref<8x128xf32, #tpu.memory_space<vmem>>, vector<8x128xf32>,
    } else {
    }
    %c0 = arith.constant 0 : index
    %c0_1 = arith.constant 0 : index
    %3 = vector.load %arg2[%c0, %c0_1] : memref<56x128xf32, #tpu.memory_space<vmem>>, vector<8x128xf32>
    %c8 = arith.constant 8 : index
    %c0_2 = arith.constant 0 : index
    %4 = vector.load %arg2[%c8, %c0_2] : memref<56x128xf32, #tpu.memory_space<vmem>>, vector<8x128xf32>
    %c16 = arith.constant 16 : index
    %c0_3 = arith.constant 0 : index
    %5 = vector.load %arg2[%c16, %c0_3] : memref<56x128xf32, #tpu.memory_space<vmem>>, vector<8x128xf32>
    %c24 = arith.constant 24 : index
    %c0_4 = arith.constant 0 : index
    %6 = vector.load %arg2[%c24, %c0_4] : memref<56x128xf32, #tpu.memory_space<vmem>>, vector<8x128xf32>
    %c32 = arith.constant 32 : index
    %c0_5 = arith.constant 0 : index
    %7 = vector.load %arg2[%c32, %c0_5] : memref<56x128xf32, #tpu.memory_space<vmem>>, vector<8x128xf32>
    %c40 = arith.constant 40 : index
    %c0_6 = arith.constant 0 : index
    %8 = vector.load %arg2[%c40, %c0_6] : memref<56x128xf32, #tpu.memory_space<vmem>>, vector<8x128xf32>
    %c48 = arith.constant 48 : index
    %c0_7 = arith.constant 0 : index
    %9 = vector.load %arg2[%c48, %c0_7] : memref<56x128xf32, #tpu.memory_space<vmem>>, vector<8x128xf32>
    %c0_8 = arith.constant 0 : index
    %c0_9 = arith.constant 0 : index
    %10 = vector.load %arg4[%c0_8, %c0_9] : memref<8x128xf32, #tpu.memory_space<vmem>>, vector<8x128xf32>
    %11 = arith.addf %3, %9 : vector<8x128xf32>
    %12 = arith.subf %11, %4 : vector<8x128xf32>
    %13 = math.absf %12 : vector<8x128xf32>
    %14 = arith.subf %3, %9 : vector<8x128xf32>
    %15 = arith.subf %14, %5 : vector<8x128xf32>
    %16 = math.absf %15 : vector<8x128xf32>
    %17 = arith.addf %13, %16 : vector<8x128xf32>
    %18 = arith.subf %6, %7 : vector<8x128xf32>
    %19 = math.absf %18 : vector<8x128xf32>
    %20 = arith.subf %6, %8 : vector<8x128xf32>
    %21 = math.absf %20 : vector<8x128xf32>
    %22 = arith.addf %19, %21 : vector<8x128xf32>
    %cst = arith.constant 5.000000e-01 : f32
    %23 = vector.broadcast %cst : f32 to vector<8x128xf32>
    %24 = arith.mulf %23, %22 : vector<8x128xf32>
    %25 = arith.addf %17, %24 : vector<8x128xf32>
    %26 = arith.addf %10, %25 : vector<8x128xf32>
    %c0_10 = arith.constant 0 : index
    %c0_11 = arith.constant 0 : index
    %27 = vector.load %arg4[%c0_10, %c0_11] : memref<8x128xf32, #tpu.memory_space<vmem>>, vector<8x128xf32>
    tpu.vector_store %arg4[%c0_10, %c0_11], %26 {strides = array<i32>} : memref<8x128xf32, #tpu.memory_space<vmem>>, vector<8x128xf32>,
    %c0_i32_12 = arith.constant 0 : i32
    %28 = arith.cmpi eq, %arg0, %c0_i32_12 : i32
    %29 = arith.extui %28 : i1 to i32
    %c0_i32_13 = arith.constant 0 : i32
    %30 = arith.cmpi ne, %29, %c0_i32_13 : i32
    scf.if %30 {
      %c0_14 = arith.constant 0 : index
      %c0_15 = arith.constant 0 : index
      %31 = vector.load %arg4[%c0_14, %c0_15] : memref<8x128xf32, #tpu.memory_space<vmem>>, vector<8x128xf32>
      %32 = vector.shape_cast %31 : vector<8x128xf32> to vector<1x8x128xf32>
      %cst_16 = arith.constant dense<0.000000e+00> : vector<1xf32>
      %33 = vector.multi_reduction <add>, %32, %cst_16 [1, 2] : vector<1x8x128xf32> to vector<1xf32>
      %34 = vector.shape_cast %33 : vector<1xf32> to vector<1x1x1xf32>
      %35 = vector.extract %34[0, 0, 0] : f32 from vector<1x1x1xf32>
      %c0_17 = arith.constant 0 : index
      %c0_18 = arith.constant 0 : index
      %36 = memref.load %arg1[%c0_17, %c0_18] : memref<1x1xf32, #tpu.memory_space<smem>>
      %37 = arith.mulf %35, %36 : f32
      %c0_19 = arith.constant 0 : index
      %c0_20 = arith.constant 0 : index
      %38 = memref.load %arg3[%c0_19, %c0_20] : memref<1x1xf32, #tpu.memory_space<smem>>
      memref.store %37, %arg3[%c0_19, %c0_20] : memref<1x1xf32, #tpu.memory_space<smem>>
    } else {
    }
    return
  }
  func.func @transform_0(%arg0: i32) -> (i32, i32) {
    %c0_i32 = arith.constant 0 : i32
    %c0_i32_0 = arith.constant 0 : i32
    %c0_i32_1 = arith.constant 0 : i32
    return %c0_i32, %c0_i32_0 : i32, i32
  }
  func.func @transform_1(%arg0: i32) -> (i32, i32) {
    %c0_i32 = arith.constant 0 : i32
    %c0_i32_0 = arith.constant 0 : i32
    return %c0_i32, %arg0 : i32, i32
  }
  func.func @transform_2(%arg0: i32) -> (i32, i32) {
    %c0_i32 = arith.constant 0 : i32
    %c0_i32_0 = arith.constant 0 : i32
    %c0_i32_1 = arith.constant 0 : i32
    return %c0_i32, %c0_i32_0 : i32, i32
  }
}

</mosaic_0001>

<bundles_post_ra>
// kernel: tpu_custom_call.1
= control target key start
LH: loop header
LB: loop body
LE: loop exit
PB: predicated region body
PF: predicated region fallthrough
CT: control target
= control target key end

     0   :  { %8 = vsyncpa [#allocation5], 0  ;;  %s175_s0 = inlined_call_operand.<no memory space> [shape: f32[1,1], index: 0, kind: input, shape index: {}]   ;;  %s176_s1 = inlined_call_operand.hbm [shape: f32[56,128], index: 1, kind: input, shape index: {}]   ;;  %s177_s2 = inlined_call_operand.hbm [shape: f32[1,1], index: 2, kind: output, shape index: {}]  }
   0x1   :  { %9 = vsyncpa [#allocation6], 0  ;;  %s129_s9 = smov [#allocation4]   ;;  %s93_s13 = scalar_lea.hbm %s176_s1, 896 }
   0x2   :  { %s17_s10 = sshll.u32 %s129_s9, 4  ;;  %p94_p0 = scmp.ne.s32.totalorder %s176_s1, %s93_s13  ;;  %s18_s10 = int_to_ptr.vmem [resolvable:$true] %s17_s10 }
   0x3   :  { %p97_p1 = scmp.lt.u32.totalorder %s93_s13, %s176_s1 }
   0x5   :  { %p99_p2 = pnand %p97_p1, %p94_p0 }
   0x7   :  { %102 = shalt.err (!%p99_p2)
}
   0x8   :  { %s103_s18 = scalar_lea.vmem %s18_s10, 896  ;;  %p108_p4 = scmp.lt.s32.totalorder %s18_s10, %s18_s10 }
   0x9   :  { %p104_p3 = scmp.ne.s32.totalorder %s18_s10, %s103_s18  ;;  %p109_p5 = scmp.lt.s32.totalorder %s103_s18, %s103_s18 }
   0xb   :  { %p110_p6 = por %p109_p5, %p108_p4 }
   0xd   :  { %p111_p7 = pnand %p110_p6, %p104_p3 }
   0xf   :  { %114 = shalt.err (!%p111_p7)
}
  0x10   :  { %s130_s19 = smov 128   ;;  %s131_s20 = smov 8  }
  0x11   :  { %23 = dma.hbm_to_vmem [thread:$0]  %s176_s1, 896, %s18_s10, [#allocation5], %s130_s19, %s130_s19, %s131_s20  }
  0x12   :  { %125 = dma.done.wait [#allocation5], 896  }
  0x13   :  { %126 = vsyncadd [#allocation5], 4294966400  ;;  %v32_v0 = vld [vmem:[#allocation4] sm:$0xff]  ;;  %v35_v1 = vld [vmem:[#allocation4 + $0x18] sm:$0xff]  ;;  %s115_s28 = scalar_lea.hbm %s177_s2, 16 }
  0x14   :  { %v36_v2 = vld [vmem:[#allocation4 + $0x20] sm:$0xff]  ;;  %v37_v3 = vld [vmem:[#allocation4 + $0x28] sm:$0xff]  ;;  %v34_v5 = vld [vmem:[#allocation4 + $0x10] sm:$0xff]  ;;  %p116_p8 = scmp.ne.s32.totalorder %s177_s2, %s115_s28  ;;  %p119_p9 = scmp.lt.u32.totalorder %s115_s28, %s177_s2 }
  0x15   :  { %v33_v4 = vld [vmem:[#allocation4 + $0x8] sm:$0xff]  ;;  %v38_v6 = vld [vmem:[#allocation4 + $0x30] sm:$0xff]  ;;  %v47_v7 = vsub.f32 %v35_v1, %v36_v2  ;;  %v49_v8 = vsub.f32 %v35_v1, %v37_v3 }
  0x16   :  { %v40_v9 = vadd.f32 %v38_v6, %v32_v0  ;;  %v43_v10 = vsub.f32 %v32_v0, %v38_v6  ;;  %p121_p10 = pnand %p119_p9, %p116_p8 }
  0x17   :  { %v48_v11 = vand.u32 2147483647, %v47_v7  ;;  %v50_v12 = vand.u32 2147483647, %v49_v8 }
  0x18   :  { %v41_v13 = vsub.f32 %v40_v9, %v33_v4  ;;  %v44_v14 = vsub.f32 %v43_v10, %v34_v5 }
  0x19   :  { %v51_v15 = vadd.f32 %v50_v12, %v48_v11 }
  0x1a   :  { %v42_v16 = vand.u32 2147483647, %v41_v13  ;;  %v45_v17 = vand.u32 2147483647, %v44_v14 }
  0x1b   :  { %v52_v18 = vmul.f32 0.5, %v51_v15 }
  0x1c   :  { %v46_v19 = vadd.f32 %v45_v17, %v42_v16 }
  0x1e   :  { %v53_v20 = vadd.f32 %v52_v18, %v46_v19 }
  0x20   :  { %60 = vadd.xlane.f32.xlu0 %v53_v20 }
  0xad   :  { %v61_v21 = vpop.xlane.xlu0 %60 }
  0xae   :  { %v62_v22 = vrot.slane %v61_v21, 4 }
  0xb0   :  { %v63_v23 = vadd.f32 %v62_v22, %v61_v21 }
  0xb2   :  { %v64_v24 = vrot.slane %v63_v23, 2 }
  0xb4   :  { %v65_v25 = vadd.f32 %v64_v24, %v63_v23 }
  0xb6   :  { %v66_v26 = vrot.slane %v65_v25, 1 }
  0xb8   :  { %v67_v27 = vadd.f32 %v66_v26, %v65_v25 }
  0xba   :  { %87 = vpush %v67_v27 }
  0xeb   :  { %s88_s1 = spop %87 }
  0xec   :  { %s70_s25 = smul.f32 %s88_s1, %s175_s0 }
  0xee   :  { %72 = sst [smem:[#allocation7]] %s70_s25 }
  0xef   :  { %124 = shalt.err (!%p121_p10)
}
  0xf0   :  { %s132_s5 = smov [#allocation7]  }
  0xf1   :  { %80 = dma.smem_to_hbm %s132_s5, 16, %s177_s2, [#allocation6]  }
  0xf2   :  { %127 = dma.done.wait [#allocation6], 16  }
  0xf3   :  { %128 = vsyncadd [#allocation6], 4294967280 }
  0xf4   :  { %84 = sfence }
  0xf5   :  { %85 = vsyncpa [#allocation5], 1 }
  0xf6   :  { %86 = vsyncpa [#allocation6], 1 }

</bundles_post_ra>
